<compile_context>
chip_gen: v7x
topology: tpu7x:2x2x1
jax: 0.10.0
libtpu: 0.0.40
codegen_flags: <defaults>
</compile_context>

<pallas_src>
import numpy as np

import jax
import jax.numpy as jnp
from jax import lax
from jax.experimental import pallas as pl
from jax.experimental.pallas import tpu as pltpu


_TG_DEFAULT = 512  # lane-dense gene tile: multiple of 128, amortizes per-step overhead


def _vmem_budget_bytes():
    """Generation-aware VMEM budget: ~80% of physical VMEM, capped at 112 MiB."""
    cap = None
    try:
        cap = int(pltpu.get_tpu_info().vmem_capacity_bytes)
    except Exception:
        cap = None
    if not cap or cap <= 0:
        kind = ""
        try:
            kind = jax.devices()[0].device_kind.lower()
        except Exception:
            pass
        # v5e / v6e have 128 MiB of VMEM per TensorCore; assume v7x-like 64 MiB else.
        cap = 128 * 2**20 if any(t in kind for t in ("v5 lite", "v5e", "v6")) else 64 * 2**20
    # ~51 MiB on v7x, ~102 MiB on v5e/v6e: leaves headroom for compiler scratch.
    return int(min(cap * 4 // 5, 112 * 2**20))


def _choose_tiles(S, G, C, w_isize, x_isize, o_isize, budget, *, single_buffer_ok=True):
    """Pick (spot_tile, gene_tile, cell_tile, single_buffer_w) under `budget` bytes."""
    tg = G if G <= _TG_DEFAULT else _TG_DEFAULT

    def footprint(ts, tk, w_bufs):
        return (w_bufs * tk * ts * w_isize      # W blocks
                + 2 * tk * tg * x_isize         # X blocks (double buffered)
                + 2 * ts * tg * o_isize         # output blocks (double buffered)
                + ts * tg * 4)                  # f32 accumulator scratch

    one = 1 if single_buffer_ok else 2
    # Ideal: whole W resident (single-buffered), full-C contraction -> X streamed once.
    if footprint(S, C, one) <= budget:
        return S, tg, C, single_buffer_ok

    # Otherwise maximize the spot tile first (X is re-read from HBM ceil(S/ts) times),
    # then grow the K (cells) tile; K-tiling keeps the kernel MXU-bound at any C.
    ts_cands = [S] + [m for m in (8192, 4096, 2048, 1024, 512, 256, 128) if m < S]
    tk_cands = [C] + [m for m in (4096, 2048, 1024, 512, 256) if m < C]
    for ts in ts_cands:
        for tk in tk_cands:
            w_bufs = one if tk == C else 2
            if footprint(ts, tk, w_bufs) <= budget:
                return ts, tg, tk, (tk == C and single_buffer_ok)
    return min(S, 128), tg, min(C, 256), False  # last resort (tiny budgets)


def _make_kernel(*, contract_dim0, mask_k, c_total, tk):
    """K-tiled contraction: o[ts,tg] = sum_k contract(W_blk, X_blk), f32 accumulation."""

    def kernel(w_ref, x_ref, o_ref, acc_ref):
        k = pl.program_id(2)  # Cells reduction axis (innermost, "arbitrary")

        @pl.when(k == 0)
        def _init():
            acc_ref[...] = jnp.zeros_like(acc_ref)

        w = w_ref[...]
        x = x_ref[...]
        if x.dtype != w.dtype:
            # X was left in its HBM dtype (streamed once); cast per-tile on the VPU.
            x = x.astype(w.dtype)
        if mask_k:
            # Zero the padded cell-rows of the last K block in BOTH operands so stale
            # VMEM (possibly non-finite) never pollutes the accumulation.
            base = k * tk
            rx = lax.broadcasted_iota(jnp.int32, x.shape, 0)
            x = jnp.where(base + rx < c_total, x, jnp.zeros_like(x))
            wk = 0 if contract_dim0 else 1
            rw = lax.broadcasted_iota(jnp.int32, w.shape, wk)
            w = jnp.where(base + rw < c_total, w, jnp.zeros_like(w))

        if contract_dim0:
            # W block is in its natural [Cells, Spots] layout: contract dim 0 of both
            # operands on the MXU -> [ts, tg] (no host- or kernel-side transpose).
            acc_ref[...] += lax.dot_general(
                w, x, (((0,), (0,)), ((), ())),
                preferred_element_type=jnp.float32)
        else:
            # Safe-mode layout: W block is the host-transposed W_T [Spots, Cells].
            acc_ref[...] += jnp.dot(w, x, preferred_element_type=jnp.float32)

        @pl.when(k == pl.num_programs(2) - 1)
        def _store():
            o_ref[...] = acc_ref[...].astype(o_ref.dtype)

    return kernel


def _build_call(*, S, G, C, ts, tg, tk, out_dtype, w_isize, x_isize,
                gene_major, single_buffer_w, vmem_limit, safe_mode):
    ns, ng, nk = pl.cdiv(S, ts), pl.cdiv(G, tg), pl.cdiv(C, tk)
    mask_k = (C % tk) != 0
    contract_dim0 = not safe_mode

    # Grid ordering: keep the leading (megacore-sharded) parallel axis non-degenerate
    # on v7x — if the spot axis collapses to one tile, lead with the gene axis.
    if gene_major:
        grid = (ng, ns, nk)
        w_map = (lambda g, s, k: (k, s)) if contract_dim0 else (lambda g, s, k: (s, k))
        x_map = lambda g, s, k: (k, g)
        o_map = lambda g, s, k: (s, g)
    else:
        grid = (ns, ng, nk)
        w_map = (lambda s, g, k: (k, s)) if contract_dim0 else (lambda s, g, k: (s, k))
        x_map = lambda s, g, k: (k, g)
        o_map = lambda s, g, k: (s, g)

    w_block = (tk, ts) if contract_dim0 else (ts, tk)
    w_spec_kwargs = {}
    if single_buffer_w and nk == 1 and not safe_mode:
        # Stationary operand: its block index is invariant along the inner grid axes,
        # so the second pipeline buffer is pure VMEM waste -> single-buffer it.
        w_spec_kwargs["pipeline_mode"] = pl.Buffered(1)

    kernel = _make_kernel(contract_dim0=contract_dim0, mask_k=mask_k,
                          c_total=C, tk=tk)

    extra = {}
    if not safe_mode:
        extra["cost_estimate"] = pl.CostEstimate(
            flops=2 * S * C * G,
            transcendentals=0,
            bytes_accessed=(ns * C * G * x_isize + ng * C * S * w_isize
                            + S * G * np.dtype(out_dtype).itemsize))

    return pl.pallas_call(
        kernel,
        out_shape=jax.ShapeDtypeStruct((S, G), out_dtype),
        grid_spec=pltpu.PrefetchScalarGridSpec(
            num_scalar_prefetch=0,
            grid=grid,
            in_specs=[
                pl.BlockSpec(w_block, w_map, **w_spec_kwargs),
                pl.BlockSpec((tk, tg), x_map),
            ],
            out_specs=pl.BlockSpec((ts, tg), o_map),
            scratch_shapes=[pltpu.VMEM((ts, tg), jnp.float32)],
        ),
        compiler_params=pltpu.CompilerParams(
            dimension_semantics=("parallel", "parallel", "arbitrary"),
            vmem_limit_bytes=int(vmem_limit),
        ),
        **extra,
    )


def transimp_forward(X, trans, *, compute_dtype=None, out_dtype=jnp.float32,
                     _tiles=None):
    """Y_hat = softmax(trans, axis=0).T @ X  -> [Spots, Genes].

    X     : [Cells, Genes]   reference gene signature
    trans : [Cells, Spots]   nn.Parameter of RaTranslator (mapping_mode="full")
    compute_dtype : dtype fed to the MXU (e.g. jnp.bfloat16); accumulation is f32.
    out_dtype     : output dtype (bf16 halves HBM writeback in the small-C regime).
    """
    C, G = X.shape
    C2, S = trans.shape
    if C != C2:
        raise ValueError("X rows (Cells) must match trans rows (dim_ref_inputs)")

    compute_dtype = np.dtype(X.dtype if compute_dtype is None else compute_dtype)
    out_dtype = np.dtype(out_dtype)
    w_isize = compute_dtype.itemsize
    o_isize = out_dtype.itemsize

    # Column softmax over Cells (dim=0): once, in f32, kept in its natural [C, S]
    # layout (no host-side transpose / extra HBM shuffle).
    W = jax.nn.softmax(trans.astype(jnp.float32), axis=0).astype(compute_dtype)

    vmem_limit = _vmem_budget_bytes()
    tile_budget = vmem_limit * 9 // 10  # headroom inside the limit

    if _tiles is not None:  # testing hook: force a tile configuration
        ts, tg, tk = _tiles
        single_w = (tk == C)
    else:
        ts, tg, tk, single_w = _choose_tiles(
            S, G, C, w_isize, w_isize, o_isize, tile_budget)

    ns, ng = pl.cdiv(S, ts), pl.cdiv(G, tg)

    # Pre-cast X in HBM only when it is re-streamed (>= 2 passes); when it is read
    # exactly once, cast per-tile in-kernel and skip the extra [C, G] HBM round trip.
    x_in = X
    if X.dtype != compute_dtype:
        if ns > 1:
            x_in = X.astype(compute_dtype)
        else:
            w_bufs = 1 if single_w else 2
            native_fp = (w_bufs * tk * ts * w_isize + 2 * tk * tg * X.dtype.itemsize
                         + 2 * ts * tg * o_isize + ts * tg * 4)
            if native_fp > tile_budget:
                x_in = X.astype(compute_dtype)

    gene_major = (ns == 1 and ng > 1)
    common = dict(S=S, G=G, C=C, out_dtype=out_dtype, w_isize=w_isize,
                  x_isize=x_in.dtype.itemsize, vmem_limit=vmem_limit)

    try:
        call = _build_call(ts=ts, tg=tg, tk=tk, gene_major=gene_major,
                           single_buffer_w=single_w, safe_mode=False, **common)
        return call(W, x_in)
    except Exception:
        # Fully-safe fallback: host-transposed W_T [S, C], plain jnp.dot,
        # default double buffering, no pipeline_mode / cost estimate.
        if _tiles is None:
            ts, tg, tk, _ = _choose_tiles(
                S, G, C, w_isize, x_in.dtype.itemsize, o_isize, tile_budget,
                single_buffer_ok=False)
            ns, ng = pl.cdiv(S, ts), pl.cdiv(G, tg)
            gene_major = (ns == 1 and ng > 1)
        call = _build_call(ts=ts, tg=tg, tk=tk, gene_major=gene_major,
                           single_buffer_w=False, safe_mode=True, **common)
        return call(W.T, x_in)


def _ref_forward_np(X, trans):
    """float64 NumPy reference of the PyTorch forward: Y_hat = (X.T @ softmax(trans,0)).T"""
    Xn = np.asarray(X, dtype=np.float64)
    Tn = np.asarray(trans, dtype=np.float64)
    Wn = np.exp(Tn - Tn.max(axis=0, keepdims=True))
    Wn = Wn / Wn.sum(axis=0, keepdims=True)
    return (Xn.T @ Wn).T


if __name__ == "__main__":
    # Small shapes consistent with the module:
    #   Cells (dim_ref_inputs) = 32, Spots (dim_tgt_outputs) = 16, Genes = 700
    # (G = 700 exercises a partial last gene tile with the 512-wide gene tile.)
    C, S, G = 32, 16, 700
    key = jax.random.PRNGKey(0)
    k_x, k_t, k_x2, k_t2 = jax.random.split(key, 4)

    X = jax.random.normal(k_x, (C, G), dtype=jnp.float32)       # [Cells, Genes]
    trans = jax.random.normal(k_t, (C, S), dtype=jnp.float32)   # randn(dim_ref_inputs, dim_tgt_outputs)
    y_ref = _ref_forward_np(X, trans)

    # f32 path (tolerance robust to whichever f32 MXU precision mode Mosaic selects).
    y = jax.block_until_ready(transimp_forward(X, trans))
    assert y.shape == (S, G) and y.dtype == jnp.float32
    assert np.allclose(np.asarray(y, dtype=np.float64), y_ref, atol=1e-2, rtol=1e-2), \
        "f32 mismatch vs reference"

    # bf16 MXU operands (f32 accumulation, f32 output) — looser tolerance.
    y_bf16 = jax.block_until_ready(
        transimp_forward(X, trans, compute_dtype=jnp.bfloat16))
    assert y_bf16.dtype == jnp.float32
    assert np.allclose(np.asarray(y_bf16, dtype=np.float64), y_ref, atol=5e-2, rtol=5e-2), \
        "bf16 mismatch vs reference"

    # Exercise the Cells-reduction (K-tiled) path with forced small tiles:
    # nk = ceil(600/256) = 3 with a masked partial last K block, partial spot/gene
    # tiles, and the spot-major grid ordering.
    C2, S2, G2 = 600, 200, 700
    X2 = jax.random.normal(k_x2, (C2, G2), dtype=jnp.float32)
    trans2 = jax.random.normal(k_t2, (C2, S2), dtype=jnp.float32)
    y2_ref = _ref_forward_np(X2, trans2)
    y2 = jax.block_until_ready(transimp_forward(X2, trans2, _tiles=(128, 512, 256)))
    assert y2.shape == (S2, G2)
    assert np.allclose(np.asarray(y2, dtype=np.float64), y2_ref, atol=1e-2, rtol=1e-2), \
        "K-tiled path mismatch vs reference"

    # TODO(synk): TransImp.loss() / SpaAutoCorr spatial regularization (sparse adjacency
    # matmuls, Moran's I / Geary's C) is not part of forward() and is not implemented.
    # TODO(synk): "lowrank"/"nonelinear" mapping modes are off the default "full"
    # forward path and are not implemented.

    print("KERNEL_OK")
</pallas_src>

<mosaic_0001>
module attributes {stable_mosaic.version = 11 : i64} {
  func.func @kernel(%arg0: i32, %arg1: i32, %arg2: i32, %arg3: memref<32x16xf32, #tpu.memory_space<vmem>>, %arg4: memref<32x512xf32, #tpu.memory_space<vmem>>, %arg5: memref<16x512xf32, #tpu.memory_space<vmem>>, %arg6: memref<16x512xf32, #tpu.memory_space<vmem>>) attributes {dimension_semantics = [#tpu.dimension_semantics<parallel>, #tpu.dimension_semantics<parallel>, #tpu.dimension_semantics<arbitrary>], iteration_bounds = array<i64: 2, 1, 1>, scalar_prefetch = 0 : i64, scratch_operands = 1 : i64, tpu.core_type = #tpu.core_type<tc>, window_params = [{pipeline_mode = #tpu.pipeline_mode<synchronous>, transform_indices = @transform_0, window_bounds = array<i64: 32, 16>}, {transform_indices = @transform_1, window_bounds = array<i64: 32, 512>}, {transform_indices = @transform_2, window_bounds = array<i64: 16, 512>}]} {
    %c0_i32 = arith.constant 0 : i32
    %0 = arith.cmpi eq, %arg2, %c0_i32 : i32
    %1 = arith.extui %0 : i1 to i32
    %c0_i32_0 = arith.constant 0 : i32
    %2 = arith.cmpi ne, %1, %c0_i32_0 : i32
    scf.if %2 {
      %cst_10 = arith.constant 0.000000e+00 : f32
      %12 = vector.broadcast %cst_10 : f32 to vector<16x512xf32>
      %c0_11 = arith.constant 0 : index
      %c0_12 = arith.constant 0 : index
      %13 = vector.load %arg6[%c0_11, %c0_12] : memref<16x512xf32, #tpu.memory_space<vmem>>, vector<16x512xf32>
      tpu.vector_store %arg6[%c0_11, %c0_12], %12 {strides = array<i32>} : memref<16x512xf32, #tpu.memory_space<vmem>>, vector<16x512xf32>,
    } else {
    }
    %c0 = arith.constant 0 : index
    %c0_1 = arith.constant 0 : index
    %3 = vector.load %arg3[%c0, %c0_1] : memref<32x16xf32, #tpu.memory_space<vmem>>, vector<32x16xf32>
    %c0_2 = arith.constant 0 : index
    %c0_3 = arith.constant 0 : index
    %4 = vector.load %arg4[%c0_2, %c0_3] : memref<32x512xf32, #tpu.memory_space<vmem>>, vector<32x512xf32>
    %c0_4 = arith.constant 0 : index
    %c0_5 = arith.constant 0 : index
    %5 = vector.load %arg6[%c0_4, %c0_5] : memref<16x512xf32, #tpu.memory_space<vmem>>, vector<16x512xf32>
    %cst = arith.constant dense<0.000000e+00> : vector<16x512xf32>
    %6 = tpu.matmul %3, %4, %cst {dimension_numbers = #tpu.dot_dimension_numbers<[0], [0], [1], [1], [0, 1, 1, 1], [], []>} : vector<32x16xf32>, vector<32x512xf32>, vector<16x512xf32> -> vector<16x512xf32>
    %7 = arith.addf %5, %6 : vector<16x512xf32>
    %c0_6 = arith.constant 0 : index
    %c0_7 = arith.constant 0 : index
    %8 = vector.load %arg6[%c0_6, %c0_7] : memref<16x512xf32, #tpu.memory_space<vmem>>, vector<16x512xf32>
    tpu.vector_store %arg6[%c0_6, %c0_7], %7 {strides = array<i32>} : memref<16x512xf32, #tpu.memory_space<vmem>>, vector<16x512xf32>,
    %c0_i32_8 = arith.constant 0 : i32
    %9 = arith.cmpi eq, %arg2, %c0_i32_8 : i32
    %10 = arith.extui %9 : i1 to i32
    %c0_i32_9 = arith.constant 0 : i32
    %11 = arith.cmpi ne, %10, %c0_i32_9 : i32
    scf.if %11 {
      %c0_10 = arith.constant 0 : index
      %c0_11 = arith.constant 0 : index
      %12 = vector.load %arg6[%c0_10, %c0_11] : memref<16x512xf32, #tpu.memory_space<vmem>>, vector<16x512xf32>
      %c0_12 = arith.constant 0 : index
      %c0_13 = arith.constant 0 : index
      %13 = vector.load %arg5[%c0_12, %c0_13] : memref<16x512xf32, #tpu.memory_space<vmem>>, vector<16x512xf32>
      tpu.vector_store %arg5[%c0_12, %c0_13], %12 {strides = array<i32>} : memref<16x512xf32, #tpu.memory_space<vmem>>, vector<16x512xf32>,
    } else {
    }
    return
  }
  func.func @transform_0(%arg0: i32, %arg1: i32, %arg2: i32) -> (i32, i32) {
    %c0_i32 = arith.constant 0 : i32
    return %arg2, %arg1 : i32, i32
  }
  func.func @transform_1(%arg0: i32, %arg1: i32, %arg2: i32) -> (i32, i32) {
    %c0_i32 = arith.constant 0 : i32
    return %arg2, %arg0 : i32, i32
  }
  func.func @transform_2(%arg0: i32, %arg1: i32, %arg2: i32) -> (i32, i32) {
    %c0_i32 = arith.constant 0 : i32
    return %arg1, %arg0 : i32, i32
  }
}

module attributes {stable_mosaic.version = 11 : i64} {
  func.func @kernel(%arg0: i32, %arg1: i32, %arg2: i32, %arg3: memref<16x32xf32, #tpu.memory_space<vmem>>, %arg4: memref<32x512xf32, #tpu.memory_space<vmem>>, %arg5: memref<16x512xf32, #tpu.memory_space<vmem>>, %arg6: memref<16x512xf32, #tpu.memory_space<vmem>>) attributes {dimension_semantics = [#tpu.dimension_semantics<parallel>, #tpu.dimension_semantics<parallel>, #tpu.dimension_semantics<arbitrary>], iteration_bounds = array<i64: 2, 1, 1>, scalar_prefetch = 0 : i64, scratch_operands = 1 : i64, tpu.core_type = #tpu.core_type<tc>, window_params = [{transform_indices = @transform_0, window_bounds = array<i64: 16, 32>}, {transform_indices = @transform_1, window_bounds = array<i64: 32, 512>}, {transform_indices = @transform_2, window_bounds = array<i64: 16, 512>}]} {
    %c0_i32 = arith.constant 0 : i32
    %0 = arith.cmpi eq, %arg2, %c0_i32 : i32
    %1 = arith.extui %0 : i1 to i32
    %c0_i32_0 = arith.constant 0 : i32
    %2 = arith.cmpi ne, %1, %c0_i32_0 : i32
    scf.if %2 {
      %cst_10 = arith.constant 0.000000e+00 : f32
      %12 = vector.broadcast %cst_10 : f32 to vector<16x512xf32>
      %c0_11 = arith.constant 0 : index
      %c0_12 = arith.constant 0 : index
      %13 = vector.load %arg6[%c0_11, %c0_12] : memref<16x512xf32, #tpu.memory_space<vmem>>, vector<16x512xf32>
      tpu.vector_store %arg6[%c0_11, %c0_12], %12 {strides = array<i32>} : memref<16x512xf32, #tpu.memory_space<vmem>>, vector<16x512xf32>,
    } else {
    }
    %c0 = arith.constant 0 : index
    %c0_1 = arith.constant 0 : index
    %3 = vector.load %arg3[%c0, %c0_1] : memref<16x32xf32, #tpu.memory_space<vmem>>, vector<16x32xf32>
    %c0_2 = arith.constant 0 : index
    %c0_3 = arith.constant 0 : index
    %4 = vector.load %arg4[%c0_2, %c0_3] : memref<32x512xf32, #tpu.memory_space<vmem>>, vector<32x512xf32>
    %c0_4 = arith.constant 0 : index
    %c0_5 = arith.constant 0 : index
    %5 = vector.load %arg6[%c0_4, %c0_5] : memref<16x512xf32, #tpu.memory_space<vmem>>, vector<16x512xf32>
    %cst = arith.constant dense<0.000000e+00> : vector<16x512xf32>
    %6 = tpu.matmul %3, %4, %cst {dimension_numbers = #tpu.dot_dimension_numbers<[1], [0], [0], [1], [0, 0, 1, 1], [], []>} : vector<16x32xf32>, vector<32x512xf32>, vector<16x512xf32> -> vector<16x512xf32>
    %7 = arith.addf %5, %6 : vector<16x512xf32>
    %c0_6 = arith.constant 0 : index
    %c0_7 = arith.constant 0 : index
    %8 = vector.load %arg6[%c0_6, %c0_7] : memref<16x512xf32, #tpu.memory_space<vmem>>, vector<16x512xf32>
    tpu.vector_store %arg6[%c0_6, %c0_7], %7 {strides = array<i32>} : memref<16x512xf32, #tpu.memory_space<vmem>>, vector<16x512xf32>,
    %c0_i32_8 = arith.constant 0 : i32
    %9 = arith.cmpi eq, %arg2, %c0_i32_8 : i32
    %10 = arith.extui %9 : i1 to i32
    %c0_i32_9 = arith.constant 0 : i32
    %11 = arith.cmpi ne, %10, %c0_i32_9 : i32
    scf.if %11 {
      %c0_10 = arith.constant 0 : index
      %c0_11 = arith.constant 0 : index
      %12 = vector.load %arg6[%c0_10, %c0_11] : memref<16x512xf32, #tpu.memory_space<vmem>>, vector<16x512xf32>
      %c0_12 = arith.constant 0 : index
      %c0_13 = arith.constant 0 : index
      %13 = vector.load %arg5[%c0_12, %c0_13] : memref<16x512xf32, #tpu.memory_space<vmem>>, vector<16x512xf32>
      tpu.vector_store %arg5[%c0_12, %c0_13], %12 {strides = array<i32>} : memref<16x512xf32, #tpu.memory_space<vmem>>, vector<16x512xf32>,
    } else {
    }
    return
  }
  func.func @transform_0(%arg0: i32, %arg1: i32, %arg2: i32) -> (i32, i32) {
    %c0_i32 = arith.constant 0 : i32
    return %arg1, %arg2 : i32, i32
  }
  func.func @transform_1(%arg0: i32, %arg1: i32, %arg2: i32) -> (i32, i32) {
    %c0_i32 = arith.constant 0 : i32
    return %arg2, %arg0 : i32, i32
  }
  func.func @transform_2(%arg0: i32, %arg1: i32, %arg2: i32) -> (i32, i32) {
    %c0_i32 = arith.constant 0 : i32
    return %arg1, %arg0 : i32, i32
  }
}

</mosaic_0001>

<bundles_post_ra>
// kernel: tpu_custom_call.1
= control target key start
LH: loop header
LB: loop body
LE: loop exit
PB: predicated region body
PF: predicated region fallthrough
CT: control target
= control target key end

     0   :  { %7 = vsyncpa [#allocation4], 0  ;;  %s1121_s0 = inlined_call_operand.vmem [shape: f32[32,16], index: 0, kind: input, shape index: {}]   ;;  %s1122_s1 = inlined_call_operand.hbm [shape: f32[32,700], index: 1, kind: input, shape index: {}]   ;;  %s1123_s2 = inlined_call_operand.hbm [shape: f32[16,700], index: 2, kind: output, shape index: {}]  }
   0x1   :  { %9 = vsyncpa [#allocation4 + $0x1], 0 }
   0x2   :  { %10 = vsyncpa [#allocation5], 0 }
   0x3   :  { %12 = vsyncpa [#allocation5 + $0x1], 0  ;;  %s886_s9 = smov 0   ;;  %s888_s10 = smov 0  }
   0x4   :  { %s890_s11 = smov 0   ;;  %s892_s12 = smov 0  }
   0x5   :  { %s894_s13 = smov 0   ;;  %s896_s14 = smov 0  }
   0x6 LB: > { %s640_s15 = sadd.s32 4294967295, %s862_s14   ;;  %s641_s16 = sadd.s32 4294967294, %s862_s14   ;;  %s862_s14 = sphi %s896_s14, %s18_s14   ;;  %s858_s13 = sphi %s894_s13, %s1134_s13   ;;  %s854_s12 = sphi %s892_s12, %s1133_s12   ;;  %s850_s11 = sphi %s890_s11, %s1132_s11   ;;  %s846_s10 = sphi %s888_s10, %s1131_s10   ;;  %s842_s9 = sphi %s886_s9, %s1130_s9  }
   0x7   : > { %s37_s17 = sadd.s32 1, %s858_s13  ;;  %s74_s18 = sadd.s32 1, %s850_s11 }
   0x8   : > { %p39_p0 = scmp.ge.s32.totalorder %s37_s17, 2  ;;  %p81_p1 = scmp.ne.s32.totalorder %s850_s11, %s846_s10 }
   0x9   : > { %p82_p2 = scmp.eq.s32.totalorder %s862_s14, 0  ;;  %p87_p3 = scmp.ne.s32.totalorder %s846_s10, %s842_s9 }
   0xa   : > { %s1136_s17 = smov (%p39_p0, %s37_s17), 0  ;;  %p88_p5 = scmp.eq.s32.totalorder %s640_s15, 0 }
   0xb   : > { %p83_p4 = por %p82_p2, %p81_p1  ;;  %s70_s19 = ssub.s32 %s858_s13, %s1136_s17 }
   0xc   : > { %p113_p6 = scmp.eq.s32.totalorder %s640_s15, 1  ;;  %p72_p7 = scmp.eq.s32.totalorder %s70_s19, 0 }
   0xd   : > { %p929_p8 = por %p88_p5, %p87_p3  ;;  %p119_p10 = scmp.eq.s32.totalorder %s641_s16, 1 }
   0xe   : > { %p933_p9 = por %p113_p6, %p81_p1  ;;  %p1124_p12 = scmp.ge.s32.totalorder %s862_s14, 2 }
   0xf   : > { %s938_s22 = scalar_select %p72_p7, %s850_s11, %s74_s18  }
  0x10   : > { %p940_p11 = por %p119_p10, %p87_p3  ;;  %147 = sbr.rel (%p1124_p12) target bundleno = 58 (0x3a), region = 20 }
  0x12   : > { %s1127_s23 = scalar_select %p940_p11, 1, 0 }
  0x17   : > { %150 = sbr.rel (!%p83_p4) target bundleno = 58 (0x3a), region = 24  ;;  %s151_s24 = sand.u32 (%p83_p4), 1, %s850_s11  }
  0x18   : > { %s646_s25 = sshll.u32 (%p83_p4), %s858_s13, 2  ;;  %s645_s26 = sshll.u32 (%p83_p4), %s151_s24, 7 }
  0x19   : > { %s158_s27 = ssub.s32 (%p83_p4), 6, %s646_s25  ;;  %s955_s30 = scalar_lea.sflag (%p83_p4), [#allocation4], %s151_s24 }
  0x1a   : > { %p159_p13 = scmp.lt.s32.totalorder (%p83_p4), %s158_s27, 4  ;;  %s155_s3 = scalar_lea.vmem (%p83_p4), [#allocation3], %s645_s26 }
  0x1e   : > { %s1138_s27 = smov (!%p159_p13, %s158_s27), 4 }
  0x1f   : > { %s952_s28 = sshll.u32 %s1138_s27, 9 }
  0x20   : > { %s163_s29 = ssub.s32 2048, %s952_s28 }
  0x21   : > { %164 = vsyncadd %s955_s30, %s163_s29  ;;  %p648_p0 = scmp.ne.s32.totalorder %s952_s28, 0  ;;  %s670_s4 = sshll.u32 %s858_s13, 9 }
  0x22   : > { %s963_s7 = scalar_lea.hbm %s1122_s1, %s670_s4  ;;  %s650_s8 = sshll.u32 %s1138_s27, 3 }
  0x23   : > { %s172_s15 = sshll.u32 %s155_s3, 4  ;;  %s752_s16 = scalar_lea.hbm %s963_s7, %s952_s28  ;;  %s966_s15 = int_to_ptr.vmem [resolvable:$true] %s172_s15 }
  0x24   : > { %p753_p1 = scmp.ne.s32.totalorder %s963_s7, %s752_s16  ;;  %s756_s24 = scalar_lea.hbm %s1122_s1, 3072 }
  0x25   : > { %p757_p4 = scmp.lt.u32.totalorder %s963_s7, %s1122_s1  ;;  %p758_p5 = scmp.lt.u32.totalorder %s756_s24, %s752_s16 }
  0x26   : > { %p754_p2 = pnand %p753_p1, %p648_p0  ;;  %p760_p7 = scmp.lt.u32.totalorder %s752_s16, %s963_s7 }
  0x27   : > { %p759_p6 = por %p758_p5, %p757_p4 }
  0x28   : > { %p755_p3 = pneg %p754_p2 }
  0x29   : > { %p761_p10 = por %p760_p7, %p759_p6 }
  0x2b   : > { %p762_p13 = pnand %p761_p10, %p755_p3 }
  0x2d   : > { %765 = shalt.err (!%p762_p13)
}
  0x2e   : > { %s766_s29 = scalar_lea.vmem %s966_s15, %s952_s28  ;;  %s864_s3 = smov [#allocation3]  }
  0x2f   : > { %p767_p1 = scmp.ne.s32.totalorder %s966_s15, %s766_s29  ;;  %s770_s4 = sshll.u32 %s864_s3, 4  ;;  %s771_s4 = int_to_ptr.vmem [resolvable:$false] %s770_s4 }
  0x30   : > { %s772_s5 = scalar_lea.vmem %s771_s4, 4096  ;;  %p773_p11 = scmp.lt.s32.totalorder %s966_s15, %s771_s4 }
  0x31   : > { %p768_p2 = pnand %p767_p1, %p648_p0  ;;  %p774_p4 = scmp.lt.s32.totalorder %s772_s5, %s766_s29 }
  0x33   : > { %p769_p12 = pneg %p768_p2  ;;  %p775_p5 = por %p774_p4, %p773_p11 }
  0x35   : > { %p776_p6 = pnand %p775_p5, %p769_p12 }
  0x37   : > { %779 = shalt.err (!%p776_p6)
}
  0x38   : > { %s865_s6 = smov 768   ;;  %s866_s16 = smov 512  }
  0x39   : > { %178 = dma.hbm_to_vmem [thread:$0]  (%p648_p0), %s963_s7, %s952_s28, %s966_s15, %s955_s30, %s865_s6, %s866_s16, %s650_s8  }
  0x3a PF: > { %p653_p3 = scmp.ge.s32.totalorder %s862_s14, 1  ;;  %p180_p7 = scmp.lt.s32.totalorder %s862_s14, 3 }
  0x3c   : > { %p181_p11 = pnand %p653_p3, %p180_p7 }
  0x3d   : > { %s998_s18 = sand.u32 (!%p181_p11), 1, %s846_s10  }
  0x3e   : > { %184 = sbr.rel (%p181_p11) target bundleno = 448 (0x1c0), region = 28  ;;  %s654_s19 = sshll.u32 (!%p181_p11), %s998_s18, 7 }
  0x3f   : > { %s187_s24 = scalar_lea.sflag (!%p181_p11), [#allocation4], %s998_s18  ;;  %s1002_s25 = scalar_lea.vmem (!%p181_p11), [#allocation3], %s654_s19 }
  0x45   : > { %833 = dma.done.wait (%p929_p8), %s187_s24, 2048  }
  0x46   : > { %835 = vsyncadd (%p929_p8), %s187_s24, 4294965248  ;;  %v867_v0 = vmov 0.0   ;;  %v252_v1 = vld [vmem:[%s1121_s0] sm:$0xff]  ;;  %v253_v2 = vld [vmem:[%s1121_s0 + $0x8] sm:$0xff]  ;;  %vm312_vm0 = vcmask 261120   ;;  %s655_s29 = sshll.u32 %s998_s18, 6 }
  0x47   : > { %383 = vmatprep.mubr.f32.mxu0 %v867_v0  ;;  %460 = vmatprep.mubr.f32.mxu1 %v867_v0  ;;  %v257_v3 = vld [vmem:[%s1002_s25 + $0x8] sm:$0xff]  ;;  %v259_v6 = vld [vmem:[%s1002_s25 + $0x18] sm:$0xff]  ;;  %v256_v8 = vld [vmem:[%s1002_s25] sm:$0xff]  ;;  %s1037_s3 = scalar_lea.vmem [#allocation6], %s655_s29  ;;  %s509_s4 = scalar_lea.sflag [#allocation5], %s998_s18 }
  0x48   : > { %280 = vxpose.xlu0.b32.start [1/4] (short) (narrow) %v252_v1, 16  ;;  %v261_v4 = vld [vmem:[%s1002_s25 + $0x28] sm:$0xff]  ;;  %v263_v7 = vld [vmem:[%s1002_s25 + $0x38] sm:$0xff]  ;;  %v260_v10 = vld [vmem:[%s1002_s25 + $0x20] sm:$0xff]  ;;  %s661_s5 = sshll.u32 (%p933_p9), %s854_s12, 2 }
  0x49   : > { %v676_v5 = vpack.c.bf16 %v261_v4, %v257_v3  ;;  %v684_v9 = vpack.c.bf16 %v263_v7, %v259_v6  ;;  %v258_v11 = vld [vmem:[%s1002_s25 + $0x10] sm:$0xff]  ;;  %v678_v13 = vpack.c.bf16 %v260_v10, %v256_v8  ;;  %v265_v15 = vld [vmem:[%s1002_s25 + $0x48] sm:$0xff]  ;;  %v267_v17 = vld [vmem:[%s1002_s25 + $0x58] sm:$0xff]  ;;  %s518_s6 = ssub.s32 (%p933_p9), 6, %s661_s5 }
  0x4a   : > { %v262_v12 = vld [vmem:[%s1002_s25 + $0x30] sm:$0xff]  ;;  %v269_v16 = vld [vmem:[%s1002_s25 + $0x68] sm:$0xff]  ;;  %v271_v19 = vld [vmem:[%s1002_s25 + $0x78] sm:$0xff]  ;;  %p519_p8 = scmp.lt.s32.totalorder (%p933_p9), %s518_s6, 4 }
  0x4b   : > { %677 = vmatprep.subr.bf16.mxu0 %v676_v5  ;;  %v686_v14 = vpack.c.bf16 %v262_v12, %v258_v11  ;;  %685 = vmatprep.subr.bf16.mxu1 %v684_v9  ;;  %v680_v18 = vpack.c.bf16 %v269_v16, %v265_v15  ;;  %v264_v20 = vld [vmem:[%s1002_s25 + $0x40] sm:$0xff]  ;;  %v254_v22 = vld [vmem:[%s1121_s0 + $0x10] sm:$0xff]  ;;  %v688_v23 = vpack.c.bf16 %v271_v19, %v267_v17  ;;  %v255_v28 = vld [vmem:[%s1121_s0 + $0x18] sm:$0xff] }
  0x4c   : > { %281 = vxpose.xlu0.b32.cont [2/4] (short) (narrow) %v253_v2, 16  ;;  %v268_v21 = vld [vmem:[%s1002_s25 + $0x60] sm:$0xff]  ;;  %679 = vmatpush1.bf16.msra.mxu0 %v678_v13  ;;  %v266_v25 = vld [vmem:[%s1002_s25 + $0x50] sm:$0xff] }
  0x4d   : > { %687 = vmatpush1.bf16.msra.mxu1 %v686_v14  ;;  %v682_v24 = vpack.c.bf16 %v268_v21, %v264_v20  ;;  %v270_v26 = vld [vmem:[%s1002_s25 + $0x70] sm:$0xff]  ;;  %681 = vmatprep.subr.bf16.mxu0 %v680_v18 }
  0x4e   : > { %v690_v27 = vpack.c.bf16 %v270_v26, %v266_v25  ;;  %689 = vmatprep.subr.bf16.mxu1 %v688_v23 }
  0x50   : > { %282 = vxpose.xlu0.b32.cont [3/4] (short) (narrow) %v254_v22, 16  ;;  %683 = vmatpush1.bf16.msra.mxu0 %v682_v24 }
  0x51   : > { %691 = vmatpush1.bf16.msra.mxu1 %v690_v27 }
  0x54   : > { %283 = vxpose.xlu0.b32.end [4/4] (short) (narrow) %v255_v28, 16 }
  0xc8   : > { %v296_v29 = vpop.trf.xlu0 }
  0xc9   : > { %656 = vmatmul.mubr.msk.f32.vlgmr.msra.gmra.mrb[0].mxu0 %vm312_vm0, %v296_v29  ;;  %658 = vmatmul.mubr.msk.f32.vlgmr.msra.gmra.mrb[0].mxu1 %vm312_vm0, %v296_v29 }
  0xca   : > { %389 = vmatprep.mubr.f32.mxu0 %v867_v0  ;;  %466 = vmatprep.mubr.f32.mxu1 %v867_v0 }
  0xcc   : > { %v297_v30 = vpop.trf.xlu0 }
  0xcd   : > { %657 = vmatmul.mubr.msk.f32.gmra.mrb[2].mxu0 %vm312_vm0, %v297_v30  ;;  %659 = vmatmul.mubr.msk.f32.gmra.mrb[2].mxu1 %vm312_vm0, %v297_v30 }
 0x19c   : > { %v385_v31 = vpop.f32.mrb[0].mxu0  ;;  %v462_v32 = vpop.f32.mrb[0].mxu1  ;;  %515 = sbr.rel (!%p933_p9) target bundleno = 448 (0x1c0), region = 44 }
 0x19d   : > { %500 = vst [vmem:[%s1037_s3] sm:$0xff] %v385_v31  ;;  %502 = vst [vmem:[%s1037_s3 + $0x10] sm:$0xff] %v462_v32  ;;  %v387_v33 = vpop.f32.mrb[1].mxu0  ;;  %v464_v34 = vpop.f32.mrb[1].mxu1 }
 0x19e   : > { %501 = vst [vmem:[%s1037_s3 + $0x8] sm:$0xff] %v387_v33  ;;  %503 = vst [vmem:[%s1037_s3 + $0x18] sm:$0xff] %v464_v34 }
 0x1a0   : > { %v391_v35 = vpop.f32.mrb[2].mxu0  ;;  %v468_v36 = vpop.f32.mrb[2].mxu1 }
 0x1a1   : > { %504 = vst [vmem:[%s1037_s3 + $0x20] sm:$0xff] %v391_v35  ;;  %506 = vst [vmem:[%s1037_s3 + $0x30] sm:$0xff] %v468_v36  ;;  %v393_v37 = vpop.f32.mrb[3].mxu0  ;;  %v470_v38 = vpop.f32.mrb[3].mxu1 }
 0x1a2   : > { %505 = vst [vmem:[%s1037_s3 + $0x28] sm:$0xff] %v393_v37  ;;  %507 = vst [vmem:[%s1037_s3 + $0x38] sm:$0xff] %v470_v38 }
 0x1a3   : > { %s1140_s6 = smov (!%p519_p8, %s518_s6), 4 }
 0x1a4   : > { %s1054_s16 = sshll.u32 %s1140_s6, 8 }
 0x1a5   : > { %s523_s19 = ssub.s32 1024, %s1054_s16 }
 0x1a6   : > { %524 = vsyncadd %s509_s4, %s523_s19  ;;  %p663_p9 = scmp.ne.s32.totalorder %s1054_s16, 0  ;;  %s673_s21 = sshll.u32 %s854_s12, 9 }
 0x1a7   : > { %s1064_s27 = scalar_lea.hbm %s1123_s2, %s673_s21  ;;  %s665_s28 = sshll.u32 %s1140_s6, 3 }
 0x1a8   : > { %s532_s30 = sshll.u32 %s1037_s3, 4  ;;  %s868_s7 = smov [#allocation6]   ;;  %s1068_s30 = int_to_ptr.vmem [resolvable:$true] %s532_s30 }
 0x1a9   : > { %s780_s20 = scalar_lea.vmem %s1068_s30, %s1054_s16  ;;  %s784_s8 = sshll.u32 %s868_s7, 4  ;;  %s785_s8 = int_to_ptr.vmem [resolvable:$false] %s784_s8 }
 0x1aa   : > { %p781_p12 = scmp.ne.s32.totalorder %s1068_s30, %s780_s20  ;;  %s786_s12 = scalar_lea.vmem %s785_s8, 2048 }
 0x1ab   : > { %p787_p13 = scmp.lt.s32.totalorder %s1068_s30, %s785_s8  ;;  %p788_p1 = scmp.lt.s32.totalorder %s786_s12, %s780_s20 }
 0x1ac   : > { %p782_p0 = pnand %p781_p12, %p663_p9 }
 0x1ad   : > { %p789_p2 = por %p788_p1, %p787_p13 }
 0x1ae   : > { %p783_p10 = pneg %p782_p0 }
 0x1b0   : > { %p790_p4 = pnand %p789_p2, %p783_p10 }
 0x1b2   : > { %793 = shalt.err (!%p790_p4)
}
 0x1b3   : > { %s794_s15 = scalar_lea.hbm %s1064_s27, %s1054_s16  ;;  %s798_s3 = scalar_lea.hbm %s1123_s2, 1536 }
 0x1b4   : > { %p795_p5 = scmp.ne.s32.totalorder %s1064_s27, %s794_s15  ;;  %p799_p7 = scmp.lt.u32.totalorder %s1064_s27, %s1123_s2 }
 0x1b5   : > { %p800_p11 = scmp.lt.u32.totalorder %s798_s3, %s794_s15  ;;  %p802_p12 = scmp.lt.u32.totalorder %s794_s15, %s1064_s27 }
 0x1b6   : > { %p796_p6 = pnand %p795_p5, %p663_p9 }
 0x1b7   : > { %p801_p8 = por %p800_p11, %p799_p7 }
 0x1b8   : > { %p797_p3 = pneg %p796_p6 }
 0x1b9   : > { %p803_p0 = por %p802_p12, %p801_p8 }
 0x1bb   : > { %p804_p10 = pnand %p803_p0, %p797_p3 }
 0x1bd   : > { %807 = shalt.err (!%p804_p10)
}
 0x1be   : > { %s869_s21 = smov 512   ;;  %s870_s24 = smov 768  }
 0x1bf   : > { %538 = dma.vmem_to_hbm [thread:$0]  (%p663_p9), %s1068_s30, %s1054_s16, %s1064_s27, %s509_s4, %s869_s21, %s870_s24, %s665_s28  }
 0x1c0 PF: > { %s547_s25 = sand.u32 1, %s842_s9   ;;  %p1128_p13 = scmp.ne.s32.totalorder %s1127_s23, 0 }
 0x1c1   : > { %p1129_p1 = scmp.ge.s32.totalorder %s862_s14, 2  ;;  %s548_s20 = scalar_lea.sflag [#allocation5], %s547_s25 }
 0x1c3   : > { %p695_p2 = pnand %p1129_p1, %p1128_p13 }
 0x1c5   : > { %837 = dma.done.wait (!%p695_p2), %s548_s20, 1024  }
 0x1c6   : > { %839 = vsyncadd (!%p695_p2), %s548_s20, 4294966272  ;;  %s18_s14 = sadd.s32 1, %s862_s14   ;;  %s1130_s9 = smov %s846_s10 }
 0x1c7   : > { %p15_p4 = scmp.ge.s32.totalorder %s18_s14, 4   ;;  %s1131_s10 = smov %s850_s11 }
 0x1c8   : > { %s1132_s11 = smov %s938_s22  ;;  %s1133_s12 = smov %s858_s13 }
 0x1c9   : > { %s1134_s13 = smov %s1136_s17  ;;  %17 = sbr.rel (!%p15_p4) target bundleno = 6 (0x6), region = 84 }
 0x1d0   :  { %553 = vsyncpa [#allocation4], 1 }
 0x1d1   :  { %555 = vsyncpa [#allocation4 + $0x1], 1 }
 0x1d2   :  { %556 = vsyncpa [#allocation5], 1 }
 0x1d3   :  { %558 = vsyncpa [#allocation5 + $0x1], 1 }

// kernel: tpu_custom_call.1
= control target key start
LH: loop header
LB: loop body
LE: loop exit
PB: predicated region body
PF: predicated region fallthrough
CT: control target
= control target key end

     0   :  { %7 = vsyncpa [#allocation4], 0  ;;  %s1162_s0 = inlined_call_operand.hbm [shape: f32[16,32], index: 0, kind: input, shape index: {}]   ;;  %s1163_s1 = inlined_call_operand.hbm [shape: f32[32,700], index: 1, kind: input, shape index: {}]   ;;  %s1164_s2 = inlined_call_operand.hbm [shape: f32[16,700], index: 2, kind: output, shape index: {}]  }
   0x1   :  { %8 = vsyncpa [#allocation7], 0 }
   0x2   :  { %10 = vsyncpa [#allocation7 + $0x1], 0 }
   0x3   :  { %11 = vsyncpa [#allocation5], 0 }
   0x4   :  { %13 = vsyncpa [#allocation5 + $0x1], 0  ;;  %s893_s9 = smov 0   ;;  %s895_s10 = smov 0  }
   0x5   :  { %s897_s11 = smov 0   ;;  %s899_s12 = smov 0  }
   0x6   :  { %s901_s13 = smov 0   ;;  %s903_s14 = smov 0  }
   0x7 LB: > { %s598_s15 = sadd.s32 4294967295, %s866_s14   ;;  %s599_s16 = sadd.s32 4294967294, %s866_s14   ;;  %s866_s14 = sphi %s903_s14, %s19_s14   ;;  %s862_s13 = sphi %s901_s13, %s1186_s13   ;;  %s858_s12 = sphi %s899_s12, %s1185_s12   ;;  %s854_s11 = sphi %s897_s11, %s1184_s11   ;;  %s850_s10 = sphi %s895_s10, %s1183_s10   ;;  %s846_s9 = sphi %s893_s9, %s1182_s9  }
   0x8   : > { %s38_s17 = sadd.s32 1, %s862_s13  ;;  %s75_s18 = sadd.s32 1, %s854_s11 }
   0x9   : > { %p40_p0 = scmp.ge.s32.totalorder %s38_s17, 2  ;;  %p82_p1 = scmp.ne.s32.totalorder %s854_s11, %s850_s10 }
   0xa   : > { %p83_p2 = scmp.eq.s32.totalorder %s866_s14, 0  ;;  %p88_p3 = scmp.ne.s32.totalorder %s850_s10, %s846_s9 }
   0xb   : > { %s1188_s17 = smov (%p40_p0, %s38_s17), 0  ;;  %p938_p5 = scmp.eq.s32.totalorder %s598_s15, 0 }
   0xc   : > { %p934_p4 = por %p83_p2, %p82_p1  ;;  %s71_s21 = ssub.s32 %s862_s13, %s1188_s17 }
   0xd   : > { %s1170_s20 = scalar_select %p938_p5, 1, 0 }
   0xe   : > { %s1169_s19 = scalar_select %p934_p4, 1, 0 }
   0xf   : > { %p114_p6 = scmp.eq.s32.totalorder %s598_s15, 1  ;;  %p73_p7 = scmp.eq.s32.totalorder %s71_s21, 0 }
  0x10   : > { %p946_p8 = por %p938_p5, %p88_p3  ;;  %p120_p10 = scmp.eq.s32.totalorder %s599_s16, 1 }
  0x11   : > { %p950_p9 = por %p114_p6, %p82_p1  ;;  %p600_p12 = scmp.ge.s32.totalorder %s866_s14, 1 }
  0x12   : > { %s1171_s22 = scalar_select %p946_p8, 1, 0 }
  0x13   : > { %s1172_s23 = scalar_select %p950_p9, 1, 0 }
  0x14   : > { %s955_s24 = scalar_select %p73_p7, %s854_s11, %s75_s18  }
  0x15   : > { %p957_p11 = por %p120_p10, %p88_p3  ;;  %p127_p13 = scmp.lt.s32.totalorder %s866_s14, 3 }
  0x16   : > { %s868_s27 = smov [#allocation3]   ;;  %s724_s4 = scalar_lea.hbm %s1162_s0, 256 }
  0x17   : > { %s1173_s25 = scalar_select %p957_p11, 1, 0 }
  0x18   : > { %p963_p0 = pnand %p600_p12, %p127_p13  ;;  %s143_s28 = sshll.u32 %s868_s27, 4  ;;  %s144_s28 = int_to_ptr.vmem [resolvable:$true] %s143_s28 }
  0x19   : > { %p725_p3 = scmp.ne.s32.totalorder %s1162_s0, %s724_s4  ;;  %p731_p12 = scmp.lt.u32.totalorder %s724_s4, %s1162_s0 }
  0x1a   : > { %s1174_s26 = scalar_select %p963_p0, 1, 0 }
  0x1b   : > { %p657_p1 = pneg %p963_p0 }
  0x1d   : > { %p971_p2 = pnand %p657_p1, %p938_p5 }
  0x1f   : > { %p726_p6 = pneg %p971_p2 }
  0x21   : > { %p727_p7 = pnand %p726_p6, %p725_p3 }
  0x23   : > { %p728_p10 = pneg %p727_p7 }
  0x25   : > { %p733_p13 = pnand %p731_p12, %p728_p10 }
  0x27   : > { %736 = shalt.err (!%p733_p13)
}
  0x28   : > { %s737_s15 = scalar_lea.vmem %s144_s28, 256  ;;  %p745_p8 = scmp.lt.s32.totalorder %s144_s28, %s144_s28 }
  0x29   : > { %p738_p1 = scmp.ne.s32.totalorder %s144_s28, %s737_s15  ;;  %p746_p5 = scmp.lt.s32.totalorder %s737_s15, %s737_s15 }
  0x2b   : > { %p740_p11 = pnand %p738_p1, %p726_p6  ;;  %p747_p0 = por %p746_p5, %p745_p8 }
  0x2d   : > { %p741_p9 = pneg %p740_p11 }
  0x2f   : > { %p748_p4 = pnand %p747_p0, %p741_p9 }
  0x31   : > { %751 = shalt.err (!%p748_p4)
}
  0x32   : > { %s869_s16 = smov 128   ;;  %s870_s18 = smov 8  }
  0x33   : > { %660 = dma.hbm_to_vmem [thread:$0]  (!%p971_p2), %s1162_s0, 256, %s144_s28, [#allocation4], %s869_s16, %s869_s16, %s870_s18  }
  0x34   : > { %p602_p3 = scmp.ge.s32.totalorder %s866_s14, 2 }
  0x35   : > { %p1176_p11 = scmp.ne.s32.totalorder (!%p602_p3), %s1169_s19, 0 }
  0x36   : > { %153 = sbr.rel (%p602_p3) target bundleno = 96 (0x60), region = 20 }
  0x3d   : > { %156 = sbr.rel (!%p1176_p11) target bundleno = 96 (0x60), region = 24  ;;  %s157_s30 = sand.u32 (%p1176_p11), 1, %s854_s11  }
  0x3e   : > { %s604_s3 = sshll.u32 (%p1176_p11), %s862_s13, 2  ;;  %s603_s4 = sshll.u32 (%p1176_p11), %s157_s30, 7 }
  0x3f   : > { %s164_s5 = ssub.s32 (%p1176_p11), 6, %s604_s3  ;;  %s1004_s6 = scalar_lea.sflag (%p1176_p11), [#allocation7], %s157_s30 }
  0x40   : > { %p165_p4 = scmp.lt.s32.totalorder (%p1176_p11), %s164_s5, 4  ;;  %s161_s7 = scalar_lea.vmem (%p1176_p11), [#allocation6], %s603_s4 }
  0x44   : > { %s1190_s5 = smov (!%p165_p4, %s164_s5), 4 }
  0x45   : > { %s1001_s29 = sshll.u32 %s1190_s5, 9 }
  0x46   : > { %s169_s28 = ssub.s32 2048, %s1001_s29 }
  0x47   : > { %170 = vsyncadd %s1004_s6, %s169_s28  ;;  %p606_p5 = scmp.ne.s32.totalorder %s1001_s29, 0  ;;  %s629_s19 = sshll.u32 %s862_s13, 9 }
  0x48   : > { %s1012_s16 = scalar_lea.hbm %s1163_s1, %s629_s19  ;;  %s608_s18 = sshll.u32 %s1190_s5, 3 }
  0x49   : > { %s178_s21 = sshll.u32 %s161_s7, 4  ;;  %s752_s27 = scalar_lea.hbm %s1012_s16, %s1001_s29  ;;  %s1015_s21 = int_to_ptr.vmem [resolvable:$true] %s178_s21 }
  0x4a   : > { %p753_p8 = scmp.ne.s32.totalorder %s1012_s16, %s752_s27  ;;  %s756_s4 = scalar_lea.hbm %s1163_s1, 3072 }
  0x4b   : > { %p757_p2 = scmp.lt.u32.totalorder %s1012_s16, %s1163_s1  ;;  %p758_p6 = scmp.lt.u32.totalorder %s756_s4, %s752_s27 }
  0x4c   : > { %p754_p9 = pnand %p753_p8, %p606_p5  ;;  %p760_p10 = scmp.lt.u32.totalorder %s752_s27, %s1012_s16 }
  0x4d   : > { %p759_p7 = por %p758_p6, %p757_p2 }
  0x4e   : > { %p755_p0 = pneg %p754_p9 }
  0x4f   : > { %p761_p12 = por %p760_p10, %p759_p7 }
  0x51   : > { %p762_p13 = pnand %p761_p12, %p755_p0 }
  0x53   : > { %765 = shalt.err (!%p762_p13)
}
  0x54   : > { %s766_s7 = scalar_lea.vmem %s1015_s21, %s1001_s29  ;;  %s871_s8 = smov [#allocation6]  }
  0x55   : > { %p767_p1 = scmp.ne.s32.totalorder %s1015_s21, %s766_s7  ;;  %s770_s15 = sshll.u32 %s871_s8, 4  ;;  %s771_s15 = int_to_ptr.vmem [resolvable:$false] %s770_s15 }
  0x56   : > { %s772_s30 = scalar_lea.vmem %s771_s15, 4096  ;;  %p773_p8 = scmp.lt.s32.totalorder %s1015_s21, %s771_s15 }
  0x57   : > { %p768_p11 = pnand %p767_p1, %p606_p5  ;;  %p774_p9 = scmp.lt.s32.totalorder %s772_s30, %s766_s7 }
  0x59   : > { %p769_p4 = pneg %p768_p11  ;;  %p775_p2 = por %p774_p9, %p773_p8 }
  0x5b   : > { %p776_p6 = pnand %p775_p2, %p769_p4 }
  0x5d   : > { %779 = shalt.err (!%p776_p6)
}
  0x5e   : > { %s872_s27 = smov 768   ;;  %s873_s3 = smov 512  }
  0x5f   : > { %184 = dma.hbm_to_vmem [thread:$0]  (%p606_p5), %s1012_s16, %s1001_s29, %s1015_s21, %s1004_s6, %s872_s27, %s873_s3, %s608_s18  }
  0x60 PF: > { %p1177_p0 = scmp.ne.s32.totalorder %s1174_s26, 0 }
  0x61   : > { %p1178_p7 = scmp.ne.s32.totalorder (!%p1177_p0), %s1170_s20, 0 }
  0x62   : > { %190 = sbr.rel (%p1177_p0) target bundleno = 370 (0x172), region = 28 }
  0x69   : > { %833 = dma.done.wait (%p1178_p7), [#allocation4], 256  }
  0x6a   : > { %835 = vsyncadd (%p1178_p7), [#allocation4], 4294967040  ;;  %s1051_s4 = sand.u32 1, %s850_s10   ;;  %p1179_p5 = scmp.ne.s32.totalorder %s1171_s22, 0 }
  0x6b   : > { %s613_s28 = sshll.u32 %s1051_s4, 7  ;;  %s197_s5 = scalar_lea.sflag [#allocation7], %s1051_s4 }
  0x6c   : > { %s1055_s29 = scalar_lea.vmem [#allocation6], %s613_s28 }
  0x6d   : > { %837 = dma.done.wait (%p1179_p5), %s197_s5, 2048  }
  0x6e   : > { %839 = vsyncadd (%p1179_p5), %s197_s5, 4294965248  ;;  %v874_v0 = vmov 0.0   ;;  %v249_v1 = vld [vmem:[%s1055_s29 + $0x8] sm:$0xff]  ;;  %v251_v3 = vld [vmem:[%s1055_s29 + $0x18] sm:$0xff]  ;;  %vm272_vm0 = vcmask 261120   ;;  %s614_s20 = sshll.u32 %s1051_s4, 6 }
  0x6f   : > { %343 = vmatprep.mubr.f32.mxu0 %v874_v0  ;;  %420 = vmatprep.mubr.f32.mxu1 %v874_v0  ;;  %v253_v2 = vld [vmem:[%s1055_s29 + $0x28] sm:$0xff]  ;;  %v255_v5 = vld [vmem:[%s1055_s29 + $0x38] sm:$0xff]  ;;  %v248_v6 = vld [vmem:[%s1055_s29] sm:$0xff]  ;;  %s1078_s22 = scalar_lea.vmem [#allocation8], %s614_s20  ;;  %s469_s26 = scalar_lea.sflag [#allocation5], %s1051_s4 }
  0x70   : > { %v635_v4 = vpack.c.bf16 %v253_v2, %v249_v1  ;;  %v252_v7 = vld [vmem:[%s1055_s29 + $0x20] sm:$0xff]  ;;  %v643_v8 = vpack.c.bf16 %v255_v5, %v251_v3  ;;  %v250_v10 = vld [vmem:[%s1055_s29 + $0x10] sm:$0xff]  ;;  %v257_v12 = vld [vmem:[%s1055_s29 + $0x48] sm:$0xff]  ;;  %p1180_p10 = scmp.ne.s32.totalorder %s1172_s23, 0 }
  0x71   : > { %v637_v9 = vpack.c.bf16 %v252_v7, %v248_v6  ;;  %v254_v11 = vld [vmem:[%s1055_s29 + $0x30] sm:$0xff]  ;;  %v261_v14 = vld [vmem:[%s1055_s29 + $0x68] sm:$0xff]  ;;  %v259_v15 = vld [vmem:[%s1055_s29 + $0x58] sm:$0xff]  ;;  %s620_s6 = sshll.u32 (%p1180_p10), %s858_s12, 2 }
  0x72   : > { %636 = vmatprep.subr.bf16.mxu0 %v635_v4  ;;  %v645_v13 = vpack.c.bf16 %v254_v11, %v250_v10  ;;  %v263_v16 = vld [vmem:[%s1055_s29 + $0x78] sm:$0xff]  ;;  %644 = vmatprep.subr.bf16.mxu1 %v643_v8  ;;  %v639_v17 = vpack.c.bf16 %v261_v14, %v257_v12  ;;  %v256_v19 = vld [vmem:[%s1055_s29 + $0x40] sm:$0xff]  ;;  %v258_v21 = vld [vmem:[%s1055_s29 + $0x50] sm:$0xff]  ;;  %s478_s16 = ssub.s32 (%p1180_p10), 6, %s620_s6 }
  0x73   : > { %638 = vmatpush1.bf16.msra.mxu0 %v637_v9  ;;  %v647_v18 = vpack.c.bf16 %v263_v16, %v259_v15  ;;  %v260_v20 = vld [vmem:[%s1055_s29 + $0x60] sm:$0xff]  ;;  %v262_v23 = vld [vmem:[%s1055_s29 + $0x70] sm:$0xff]  ;;  %v247_v26 = vld [vmem:[#allocation3 + $0x8] sm:$0xff]  ;;  %p479_p12 = scmp.lt.s32.totalorder (%p1180_p10), %s478_s16, 4 }
  0x74   : > { %646 = vmatpush1.bf16.msra.mxu1 %v645_v13  ;;  %v641_v22 = vpack.c.bf16 %v260_v20, %v256_v19  ;;  %640 = vmatprep.subr.bf16.mxu0 %v639_v17  ;;  %v649_v24 = vpack.c.bf16 %v262_v23, %v258_v21  ;;  %v246_v25 = vld [vmem:[#allocation3] sm:$0xff] }
  0x75   : > { %648 = vmatprep.subr.bf16.mxu1 %v647_v18 }
  0x77   : > { %642 = vmatpush1.bf16.msra.mxu0 %v641_v22 }
  0x78   : > { %650 = vmatpush1.bf16.msra.mxu1 %v649_v24 }
  0x7a   : > { %615 = vmatmul.mubr.msk.f32.vlgmr.msra.gmra.mrb[0].mxu0 %vm272_vm0, %v246_v25 }
  0x7b   : > { %617 = vmatmul.mubr.msk.f32.vlgmr.msra.gmra.mrb[0].mxu1 %vm272_vm0, %v246_v25  ;;  %349 = vmatprep.mubr.f32.mxu0 %v874_v0 }
  0x7c   : > { %426 = vmatprep.mubr.f32.mxu1 %v874_v0 }
  0x7e   : > { %616 = vmatmul.mubr.msk.f32.gmra.mrb[2].mxu0 %vm272_vm0, %v247_v26 }
  0x7f   : > { %618 = vmatmul.mubr.msk.f32.gmra.mrb[2].mxu1 %vm272_vm0, %v247_v26 }
 0x14d   : > { %v345_v27 = vpop.f32.mrb[0].mxu0 }
 0x14e   : > { %460 = vst [vmem:[%s1078_s22] sm:$0xff] %v345_v27  ;;  %v422_v28 = vpop.f32.mrb[0].mxu1  ;;  %v347_v29 = vpop.f32.mrb[1].mxu0  ;;  %475 = sbr.rel (!%p1180_p10) target bundleno = 370 (0x172), region = 48 }
 0x14f   : > { %462 = vst [vmem:[%s1078_s22 + $0x10] sm:$0xff] %v422_v28  ;;  %461 = vst [vmem:[%s1078_s22 + $0x8] sm:$0xff] %v347_v29  ;;  %v424_v30 = vpop.f32.mrb[1].mxu1 }
 0x150   : > { %463 = vst [vmem:[%s1078_s22 + $0x18] sm:$0xff] %v424_v30 }
 0x151   : > { %v351_v31 = vpop.f32.mrb[2].mxu0 }
 0x152   : > { %464 = vst [vmem:[%s1078_s22 + $0x20] sm:$0xff] %v351_v31  ;;  %v428_v32 = vpop.f32.mrb[2].mxu1  ;;  %v353_v33 = vpop.f32.mrb[3].mxu0 }
 0x153   : > { %466 = vst [vmem:[%s1078_s22 + $0x30] sm:$0xff] %v428_v32  ;;  %465 = vst [vmem:[%s1078_s22 + $0x28] sm:$0xff] %v353_v33  ;;  %v430_v34 = vpop.f32.mrb[3].mxu1 }
 0x154   : > { %467 = vst [vmem:[%s1078_s22 + $0x38] sm:$0xff] %v430_v34 }
 0x155   : > { %s1192_s16 = smov (!%p479_p12, %s478_s16), 4 }
 0x156   : > { %s1095_s18 = sshll.u32 %s1192_s16, 8 }
 0x157   : > { %s483_s21 = ssub.s32 1024, %s1095_s18 }
 0x158   : > { %484 = vsyncadd %s469_s26, %s483_s21  ;;  %p622_p13 = scmp.ne.s32.totalorder %s1095_s18, 0  ;;  %s632_s23 = sshll.u32 %s858_s12, 9 }
 0x159   : > { %s1105_s8 = scalar_lea.hbm %s1164_s2, %s632_s23  ;;  %s624_s15 = sshll.u32 %s1192_s16, 3 }
 0x15a   : > { %s492_s30 = sshll.u32 %s1078_s22, 4  ;;  %s875_s3 = smov [#allocation8]   ;;  %s1109_s30 = int_to_ptr.vmem [resolvable:$true] %s492_s30 }
 0x15b   : > { %s780_s27 = scalar_lea.vmem %s1109_s30, %s1095_s18  ;;  %s784_s28 = sshll.u32 %s875_s3, 4  ;;  %s785_s28 = int_to_ptr.vmem [resolvable:$false] %s784_s28 }
 0x15c   : > { %p781_p1 = scmp.ne.s32.totalorder %s1109_s30, %s780_s27  ;;  %s786_s12 = scalar_lea.vmem %s785_s28, 2048 }
 0x15d   : > { %p787_p8 = scmp.lt.s32.totalorder %s1109_s30, %s785_s28  ;;  %p788_p9 = scmp.lt.s32.totalorder %s786_s12, %s780_s27 }
 0x15e   : > { %p782_p11 = pnand %p781_p1, %p622_p13 }
 0x15f   : > { %p789_p2 = por %p788_p9, %p787_p8 }
 0x160   : > { %p783_p4 = pneg %p782_p11 }
 0x162   : > { %p790_p6 = pnand %p789_p2, %p783_p4 }
 0x164   : > { %793 = shalt.err (!%p790_p6)
}
 0x165   : > { %s794_s5 = scalar_lea.hbm %s1105_s8, %s1095_s18  ;;  %s798_s22 = scalar_lea.hbm %s1164_s2, 1536 }
 0x166   : > { %p795_p0 = scmp.ne.s32.totalorder %s1105_s8, %s794_s5  ;;  %p799_p10 = scmp.lt.u32.totalorder %s1105_s8, %s1164_s2 }
 0x167   : > { %p800_p12 = scmp.lt.u32.totalorder %s798_s22, %s794_s5  ;;  %p802_p11 = scmp.lt.u32.totalorder %s794_s5, %s1105_s8 }
 0x168   : > { %p796_p7 = pnand %p795_p0, %p622_p13 }
 0x169   : > { %p801_p1 = por %p800_p12, %p799_p10 }
 0x16a   : > { %p797_p5 = pneg %p796_p7 }
 0x16b   : > { %p803_p4 = por %p802_p11, %p801_p1 }
 0x16d   : > { %p804_p8 = pnand %p803_p4, %p797_p5 }
 0x16f   : > { %807 = shalt.err (!%p804_p8)
}
 0x170   : > { %s876_s23 = smov 512   ;;  %s877_s19 = smov 768  }
 0x171   : > { %498 = dma.vmem_to_hbm [thread:$0]  (%p622_p13), %s1109_s30, %s1095_s18, %s1105_s8, %s469_s26, %s876_s23, %s877_s19, %s624_s15  }
 0x172 PF: > { %s507_s7 = sand.u32 1, %s846_s9   ;;  %p1181_p9 = scmp.ne.s32.totalorder %s1173_s25, 0 }
 0x173   : > { %s508_s27 = scalar_lea.sflag [#allocation5], %s507_s7 }
 0x174   : > { %p662_p2 = pnand %p602_p3, %p1181_p9 }
 0x176   : > { %841 = dma.done.wait (!%p662_p2), %s508_s27, 1024  }
 0x177   : > { %843 = vsyncadd (!%p662_p2), %s508_s27, 4294966272  ;;  %s19_s14 = sadd.s32 1, %s866_s14   ;;  %s1182_s9 = smov %s850_s10 }
 0x178   : > { %p16_p6 = scmp.ge.s32.totalorder %s19_s14, 4   ;;  %s1183_s10 = smov %s854_s11 }
 0x179   : > { %s1184_s11 = smov %s955_s24  ;;  %s1185_s12 = smov %s862_s13 }
 0x17a   : > { %s1186_s13 = smov %s1188_s17  ;;  %18 = sbr.rel (!%p16_p6) target bundleno = 7 (0x7), region = 87 }
 0x181   :  { %513 = vsyncpa [#allocation4], 1 }
 0x182   :  { %515 = vsyncpa [#allocation4 + $0x1], 1 }
 0x183   :  { %516 = vsyncpa [#allocation7], 1 }
 0x184   :  { %518 = vsyncpa [#allocation7 + $0x1], 1 }
 0x185   :  { %519 = vsyncpa [#allocation5], 1 }
 0x186   :  { %521 = vsyncpa [#allocation5 + $0x1], 1 }

</bundles_post_ra>
